<compile_context>
chip_gen: v5e
topology: v5e:2x2
jax: 0.10.0
libtpu: 0.0.40
codegen_flags: <defaults>
</compile_context>

<pallas_src>
import jax
import jax.numpy as jnp
import numpy as np
from jax.experimental import pallas as pl
from jax.experimental.pallas import tpu as pltpu


HID = 64          # LSTM hidden size
IN = 16           # LSTM input size
OUT = 9           # final output features
OUT_PAD = 128     # lane-dense padded output width


def _lstm_mlp_kernel(x_ref, wl_ref, wh_ref, out_ref):
    # x_ref:   (T*B_pad, 16)  seq-major input, flattened over (T, B_pad)
    # wl_ref:  (81, 256)      packed LSTM weights:
    #                           rows  0:16  = W_ih^T (16,256)
    #                           rows 16:80  = W_hh^T (64,256)
    #                           row  80     = b_ih + b_hh (1,256)
    # wh_ref:  (65, 128)      packed collapsed head:
    #                           rows 0:64   = W_head (64,128)  (cols 9: zero pad)
    #                           row  64     = b_head (1,128)
    # out_ref: (B_pad, 128)   lane-dense output (cols 9: junk-free zero pad)
    tb = x_ref.shape[0]
    batch = out_ref.shape[0]
    seq = tb // batch

    w_ih = wl_ref[0:IN, :]                    # (16, 256)
    w_hh = wl_ref[IN:IN + HID, :]             # (64, 256)
    b = wl_ref[IN + HID:IN + HID + 1, :]      # (1, 256)

    # --- hoisted input projection: all timesteps in one MXU matmul, bias folded in
    xg = jnp.dot(x_ref[...], w_ih, preferred_element_type=jnp.float32) + b  # (T*B, 256)

    # --- hoisted per-lane activation constants (sigmoid-via-tanh trick)
    #     gate order i,f,g,o -> lanes [0:64, 64:128, 128:192, 192:256]
    #     sigmoid(x) = 0.5*tanh(0.5*x) + 0.5 ; tanh lanes (g) untouched.
    lane = jax.lax.broadcasted_iota(jnp.int32, (1, 4 * HID), 1)
    is_g = jnp.logical_and(lane >= 2 * HID, lane < 3 * HID)
    scale = jnp.where(is_g, 1.0, 0.5)          # pre- and post-scale (identical)
    offset = jnp.where(is_g, 0.0, 0.5)

    h = jnp.zeros((batch, HID), jnp.float32)
    c = jnp.zeros((batch, HID), jnp.float32)

    # --- statically unrolled recurrence (T is small & compile-time constant)
    for t in range(seq):
        gates = xg[t * batch:(t + 1) * batch, :] + jnp.dot(
            h, w_hh, preferred_element_type=jnp.float32)            # (B, 256)
        act = jnp.tanh(gates * scale) * scale + offset               # one dense EUP pass
        i = act[:, 0 * HID:1 * HID]
        f = act[:, 1 * HID:2 * HID]
        g = act[:, 2 * HID:3 * HID]
        o = act[:, 3 * HID:4 * HID]
        c = f * c + i * g
        h = o * jnp.tanh(c)

    # --- collapsed MLP head: single matmul into a lane-dense (B,128) output
    w_head = wh_ref[0:HID, :]                  # (64, 128)
    b_head = wh_ref[HID:HID + 1, :]            # (1, 128)
    y = jnp.dot(h, w_head, preferred_element_type=jnp.float32) + b_head
    out_ref[...] = y.astype(out_ref.dtype)


def lstm_forward(x, params):
    """x: (B, T, 16) float32 -> (B, 9) float32 (eval-mode forward)."""
    (w_ih, w_hh, b_ih, b_hh, w1, b1, w2, b2) = params
    B, T, D = x.shape
    B_pad = ((B + 7) // 8) * 8                 # sublane-aligned batch

    # seq-major (matches x.permute(1,0,2)), pad batch, flatten (T,B_pad)->rows
    x_seq = jnp.transpose(x, (1, 0, 2))                         # (T, B, 16)
    x_seq = jnp.pad(x_seq, ((0, 0), (0, B_pad - B), (0, 0)))    # (T, B_pad, 16)
    x2d = x_seq.reshape(T * B_pad, D)                           # (T*B_pad, 16)

    # pack LSTM weights: [W_ih^T ; W_hh^T ; b_ih+b_hh]  -> (81, 256)
    lstm_pack = jnp.concatenate(
        [w_ih.T, w_hh.T, (b_ih + b_hh).reshape(1, 4 * HID)], axis=0)

    # collapse the head (Linear -> Dropout(eval id) -> Linear) into one affine map,
    # padded to 128 output lanes:  y = h @ W_head + b_head
    w_head = w1.T @ w2.T                                        # (64, 9)
    b_head = (b1 @ w2.T + b2).reshape(1, OUT)                   # (1, 9)
    w_head_p = jnp.pad(w_head, ((0, 0), (0, OUT_PAD - OUT)))    # (64, 128)
    b_head_p = jnp.pad(b_head, ((0, 0), (0, OUT_PAD - OUT)))    # (1, 128)
    head_pack = jnp.concatenate([w_head_p, b_head_p], axis=0)   # (65, 128)

    vmem = pl.BlockSpec(memory_space=pltpu.MemorySpace.VMEM)
    out = pl.pallas_call(
        _lstm_mlp_kernel,
        out_shape=jax.ShapeDtypeStruct((B_pad, OUT_PAD), jnp.float32),
        in_specs=[vmem, vmem, vmem],
        out_specs=vmem,
    )(x2d, lstm_pack, head_pack)
    return out[:B, :OUT]


def _reference(x, params):
    """Pure-JAX reference mirroring the PyTorch forward (eval mode)."""
    (w_ih, w_hh, b_ih, b_hh, w1, b1, w2, b2) = params
    x_seq = jnp.transpose(x, (1, 0, 2))
    B = x.shape[0]
    h = jnp.zeros((B, HID), jnp.float32)
    c = jnp.zeros((B, HID), jnp.float32)

    def step(carry, x_t):
        h, c = carry
        gates = x_t @ w_ih.T + h @ w_hh.T + b_ih + b_hh
        i = jax.nn.sigmoid(gates[:, 0 * HID:1 * HID])
        f = jax.nn.sigmoid(gates[:, 1 * HID:2 * HID])
        g = jnp.tanh(gates[:, 2 * HID:3 * HID])
        o = jax.nn.sigmoid(gates[:, 3 * HID:4 * HID])
        c_new = f * c + i * g
        h_new = o * jnp.tanh(c_new)
        return (h_new, c_new), None

    (h, c), _ = jax.lax.scan(step, (h, c), x_seq)
    z = h @ w1.T + b1
    return z @ w2.T + b2


def init_params(key):
    """Deterministic init matching PyTorch parameter shapes."""
    ks = jax.random.split(key, 8)
    bound = 1.0 / np.sqrt(HID)          # PyTorch LSTM init bound
    w_ih = jax.random.uniform(ks[0], (4 * HID, IN), jnp.float32, -bound, bound)
    w_hh = jax.random.uniform(ks[1], (4 * HID, HID), jnp.float32, -bound, bound)
    b_ih = jax.random.uniform(ks[2], (4 * HID,), jnp.float32, -bound, bound)
    b_hh = jax.random.uniform(ks[3], (4 * HID,), jnp.float32, -bound, bound)
    b1f = 1.0 / np.sqrt(64.0)
    w1 = jax.random.uniform(ks[4], (64, 64), jnp.float32, -b1f, b1f)
    b1 = jax.random.uniform(ks[5], (64,), jnp.float32, -b1f, b1f)
    w2 = jax.random.uniform(ks[6], (OUT, 64), jnp.float32, -b1f, b1f)
    b2 = jax.random.uniform(ks[7], (OUT,), jnp.float32, -b1f, b1f)
    return (w_ih, w_hh, b_ih, b_hh, w1, b1, w2, b2)


if __name__ == "__main__":
    key = jax.random.PRNGKey(0)
    k_x, k_p = jax.random.split(key)

    B, T, D = 2, 8, 16
    x = jax.random.normal(k_x, (B, T, D), jnp.float32)
    params = init_params(k_p)

    y = lstm_forward(x, params)
    y = jax.block_until_ready(y)
    assert y.shape == (B, OUT), y.shape

    y_ref = jax.block_until_ready(_reference(x, params))
    np.testing.assert_allclose(np.asarray(y), np.asarray(y_ref), rtol=1e-4, atol=1e-4)

    print("KERNEL_OK")
</pallas_src>

<mosaic_0001>
module attributes {stable_mosaic.version = 11 : i64} {
  func.func @_lstm_mlp_kernel(%arg0: memref<64x16xf32, #tpu.memory_space<vmem>>, %arg1: memref<81x256xf32, #tpu.memory_space<vmem>>, %arg2: memref<65x128xf32, #tpu.memory_space<vmem>>, %arg3: memref<8x128xf32, #tpu.memory_space<vmem>>) attributes {dimension_semantics = [], scalar_prefetch = 0 : i64, scratch_operands = 0 : i64, tpu.core_type = #tpu.core_type<tc>} {
    %c0 = arith.constant 0 : index
    %c0_0 = arith.constant 0 : index
    %0 = vector.load %arg1[%c0, %c0_0] : memref<81x256xf32, #tpu.memory_space<vmem>>, vector<16x256xf32>
    %c16 = arith.constant 16 : index
    %c0_1 = arith.constant 0 : index
    %1 = vector.load %arg1[%c16, %c0_1] : memref<81x256xf32, #tpu.memory_space<vmem>>, vector<64x256xf32>
    %c80 = arith.constant 80 : index
    %c0_2 = arith.constant 0 : index
    %2 = vector.load %arg1[%c80, %c0_2] : memref<81x256xf32, #tpu.memory_space<vmem>>, vector<1x256xf32>
    %c0_3 = arith.constant 0 : index
    %c0_4 = arith.constant 0 : index
    %3 = vector.load %arg0[%c0_3, %c0_4] : memref<64x16xf32, #tpu.memory_space<vmem>>, vector<64x16xf32>
    %cst = arith.constant dense<0.000000e+00> : vector<64x256xf32>
    %4 = tpu.matmul %3, %0, %cst {dimension_numbers = #tpu.dot_dimension_numbers<[1], [0], [0], [1], [0, 0, 1, 1], [], []>} : vector<64x16xf32>, vector<16x256xf32>, vector<64x256xf32> -> vector<64x256xf32>
    %5 = vector.broadcast %2 : vector<1x256xf32> to vector<64x256xf32>
    %6 = arith.addf %4, %5 : vector<64x256xf32>
    %7 = tpu.iota {dimensions = array<i32: 1>} : vector<1x256xi32>
    %c128_i32 = arith.constant 128 : i32
    %8 = vector.broadcast %c128_i32 : i32 to vector<1x256xi32>
    %9 = arith.cmpi sge, %7, %8 : vector<1x256xi32>
    %c192_i32 = arith.constant 192 : i32
    %10 = vector.broadcast %c192_i32 : i32 to vector<1x256xi32>
    %11 = arith.cmpi slt, %7, %10 : vector<1x256xi32>
    %12 = arith.andi %9, %11 : vector<1x256xi1>
    %cst_5 = arith.constant 1.000000e+00 : f32
    %cst_6 = arith.constant 5.000000e-01 : f32
    %13 = vector.broadcast %cst_5 : f32 to vector<1x256xf32>
    %14 = vector.broadcast %cst_6 : f32 to vector<1x256xf32>
    %15 = arith.select %12, %13, %14 : vector<1x256xi1>, vector<1x256xf32>
    %cst_7 = arith.constant 0.000000e+00 : f32
    %cst_8 = arith.constant 5.000000e-01 : f32
    %16 = vector.broadcast %cst_7 : f32 to vector<1x256xf32>
    %17 = vector.broadcast %cst_8 : f32 to vector<1x256xf32>
    %18 = arith.select %12, %16, %17 : vector<1x256xi1>, vector<1x256xf32>
    %cst_9 = arith.constant 0.000000e+00 : f32
    %19 = vector.broadcast %cst_9 : f32 to vector<8x64xf32>
    %cst_10 = arith.constant 0.000000e+00 : f32
    %20 = vector.broadcast %cst_10 : f32 to vector<8x64xf32>
    %21 = vector.extract_strided_slice %6 {offsets = [0, 0], sizes = [8, 256], strides = [1, 1]} : vector<64x256xf32> to vector<8x256xf32>
    %cst_11 = arith.constant dense<0.000000e+00> : vector<8x256xf32>
    %22 = tpu.matmul %19, %1, %cst_11 {dimension_numbers = #tpu.dot_dimension_numbers<[1], [0], [0], [1], [0, 0, 1, 1], [], []>} : vector<8x64xf32>, vector<64x256xf32>, vector<8x256xf32> -> vector<8x256xf32>
    %23 = arith.addf %21, %22 : vector<8x256xf32>
    %24 = vector.broadcast %15 : vector<1x256xf32> to vector<8x256xf32>
    %25 = arith.mulf %23, %24 : vector<8x256xf32>
    %26 = math.tanh %25 : vector<8x256xf32>
    %27 = vector.broadcast %15 : vector<1x256xf32> to vector<8x256xf32>
    %28 = arith.mulf %26, %27 : vector<8x256xf32>
    %29 = vector.broadcast %18 : vector<1x256xf32> to vector<8x256xf32>
    %30 = arith.addf %28, %29 : vector<8x256xf32>
    %31 = vector.extract_strided_slice %30 {offsets = [0, 0], sizes = [8, 64], strides = [1, 1]} : vector<8x256xf32> to vector<8x64xf32>
    %32 = vector.extract_strided_slice %30 {offsets = [0, 64], sizes = [8, 64], strides = [1, 1]} : vector<8x256xf32> to vector<8x64xf32>
    %33 = vector.extract_strided_slice %30 {offsets = [0, 128], sizes = [8, 64], strides = [1, 1]} : vector<8x256xf32> to vector<8x64xf32>
    %34 = vector.extract_strided_slice %30 {offsets = [0, 192], sizes = [8, 64], strides = [1, 1]} : vector<8x256xf32> to vector<8x64xf32>
    %35 = arith.mulf %32, %20 : vector<8x64xf32>
    %36 = arith.mulf %31, %33 : vector<8x64xf32>
    %37 = arith.addf %35, %36 : vector<8x64xf32>
    %38 = math.tanh %37 : vector<8x64xf32>
    %39 = arith.mulf %34, %38 : vector<8x64xf32>
    %40 = vector.extract_strided_slice %6 {offsets = [8, 0], sizes = [8, 256], strides = [1, 1]} : vector<64x256xf32> to vector<8x256xf32>
    %cst_12 = arith.constant dense<0.000000e+00> : vector<8x256xf32>
    %41 = tpu.matmul %39, %1, %cst_12 {dimension_numbers = #tpu.dot_dimension_numbers<[1], [0], [0], [1], [0, 0, 1, 1], [], []>} : vector<8x64xf32>, vector<64x256xf32>, vector<8x256xf32> -> vector<8x256xf32>
    %42 = arith.addf %40, %41 : vector<8x256xf32>
    %43 = vector.broadcast %15 : vector<1x256xf32> to vector<8x256xf32>
    %44 = arith.mulf %42, %43 : vector<8x256xf32>
    %45 = math.tanh %44 : vector<8x256xf32>
    %46 = vector.broadcast %15 : vector<1x256xf32> to vector<8x256xf32>
    %47 = arith.mulf %45, %46 : vector<8x256xf32>
    %48 = vector.broadcast %18 : vector<1x256xf32> to vector<8x256xf32>
    %49 = arith.addf %47, %48 : vector<8x256xf32>
    %50 = vector.extract_strided_slice %49 {offsets = [0, 0], sizes = [8, 64], strides = [1, 1]} : vector<8x256xf32> to vector<8x64xf32>
    %51 = vector.extract_strided_slice %49 {offsets = [0, 64], sizes = [8, 64], strides = [1, 1]} : vector<8x256xf32> to vector<8x64xf32>
    %52 = vector.extract_strided_slice %49 {offsets = [0, 128], sizes = [8, 64], strides = [1, 1]} : vector<8x256xf32> to vector<8x64xf32>
    %53 = vector.extract_strided_slice %49 {offsets = [0, 192], sizes = [8, 64], strides = [1, 1]} : vector<8x256xf32> to vector<8x64xf32>
    %54 = arith.mulf %51, %37 : vector<8x64xf32>
    %55 = arith.mulf %50, %52 : vector<8x64xf32>
    %56 = arith.addf %54, %55 : vector<8x64xf32>
    %57 = math.tanh %56 : vector<8x64xf32>
    %58 = arith.mulf %53, %57 : vector<8x64xf32>
    %59 = vector.extract_strided_slice %6 {offsets = [16, 0], sizes = [8, 256], strides = [1, 1]} : vector<64x256xf32> to vector<8x256xf32>
    %cst_13 = arith.constant dense<0.000000e+00> : vector<8x256xf32>
    %60 = tpu.matmul %58, %1, %cst_13 {dimension_numbers = #tpu.dot_dimension_numbers<[1], [0], [0], [1], [0, 0, 1, 1], [], []>} : vector<8x64xf32>, vector<64x256xf32>, vector<8x256xf32> -> vector<8x256xf32>
    %61 = arith.addf %59, %60 : vector<8x256xf32>
    %62 = vector.broadcast %15 : vector<1x256xf32> to vector<8x256xf32>
    %63 = arith.mulf %61, %62 : vector<8x256xf32>
    %64 = math.tanh %63 : vector<8x256xf32>
    %65 = vector.broadcast %15 : vector<1x256xf32> to vector<8x256xf32>
    %66 = arith.mulf %64, %65 : vector<8x256xf32>
    %67 = vector.broadcast %18 : vector<1x256xf32> to vector<8x256xf32>
    %68 = arith.addf %66, %67 : vector<8x256xf32>
    %69 = vector.extract_strided_slice %68 {offsets = [0, 0], sizes = [8, 64], strides = [1, 1]} : vector<8x256xf32> to vector<8x64xf32>
    %70 = vector.extract_strided_slice %68 {offsets = [0, 64], sizes = [8, 64], strides = [1, 1]} : vector<8x256xf32> to vector<8x64xf32>
    %71 = vector.extract_strided_slice %68 {offsets = [0, 128], sizes = [8, 64], strides = [1, 1]} : vector<8x256xf32> to vector<8x64xf32>
    %72 = vector.extract_strided_slice %68 {offsets = [0, 192], sizes = [8, 64], strides = [1, 1]} : vector<8x256xf32> to vector<8x64xf32>
    %73 = arith.mulf %70, %56 : vector<8x64xf32>
    %74 = arith.mulf %69, %71 : vector<8x64xf32>
    %75 = arith.addf %73, %74 : vector<8x64xf32>
    %76 = math.tanh %75 : vector<8x64xf32>
    %77 = arith.mulf %72, %76 : vector<8x64xf32>
    %78 = vector.extract_strided_slice %6 {offsets = [24, 0], sizes = [8, 256], strides = [1, 1]} : vector<64x256xf32> to vector<8x256xf32>
    %cst_14 = arith.constant dense<0.000000e+00> : vector<8x256xf32>
    %79 = tpu.matmul %77, %1, %cst_14 {dimension_numbers = #tpu.dot_dimension_numbers<[1], [0], [0], [1], [0, 0, 1, 1], [], []>} : vector<8x64xf32>, vector<64x256xf32>, vector<8x256xf32> -> vector<8x256xf32>
    %80 = arith.addf %78, %79 : vector<8x256xf32>
    %81 = vector.broadcast %15 : vector<1x256xf32> to vector<8x256xf32>
    %82 = arith.mulf %80, %81 : vector<8x256xf32>
    %83 = math.tanh %82 : vector<8x256xf32>
    %84 = vector.broadcast %15 : vector<1x256xf32> to vector<8x256xf32>
    %85 = arith.mulf %83, %84 : vector<8x256xf32>
    %86 = vector.broadcast %18 : vector<1x256xf32> to vector<8x256xf32>
    %87 = arith.addf %85, %86 : vector<8x256xf32>
    %88 = vector.extract_strided_slice %87 {offsets = [0, 0], sizes = [8, 64], strides = [1, 1]} : vector<8x256xf32> to vector<8x64xf32>
    %89 = vector.extract_strided_slice %87 {offsets = [0, 64], sizes = [8, 64], strides = [1, 1]} : vector<8x256xf32> to vector<8x64xf32>
    %90 = vector.extract_strided_slice %87 {offsets = [0, 128], sizes = [8, 64], strides = [1, 1]} : vector<8x256xf32> to vector<8x64xf32>
    %91 = vector.extract_strided_slice %87 {offsets = [0, 192], sizes = [8, 64], strides = [1, 1]} : vector<8x256xf32> to vector<8x64xf32>
    %92 = arith.mulf %89, %75 : vector<8x64xf32>
    %93 = arith.mulf %88, %90 : vector<8x64xf32>
    %94 = arith.addf %92, %93 : vector<8x64xf32>
    %95 = math.tanh %94 : vector<8x64xf32>
    %96 = arith.mulf %91, %95 : vector<8x64xf32>
    %97 = vector.extract_strided_slice %6 {offsets = [32, 0], sizes = [8, 256], strides = [1, 1]} : vector<64x256xf32> to vector<8x256xf32>
    %cst_15 = arith.constant dense<0.000000e+00> : vector<8x256xf32>
    %98 = tpu.matmul %96, %1, %cst_15 {dimension_numbers = #tpu.dot_dimension_numbers<[1], [0], [0], [1], [0, 0, 1, 1], [], []>} : vector<8x64xf32>, vector<64x256xf32>, vector<8x256xf32> -> vector<8x256xf32>
    %99 = arith.addf %97, %98 : vector<8x256xf32>
    %100 = vector.broadcast %15 : vector<1x256xf32> to vector<8x256xf32>
    %101 = arith.mulf %99, %100 : vector<8x256xf32>
    %102 = math.tanh %101 : vector<8x256xf32>
    %103 = vector.broadcast %15 : vector<1x256xf32> to vector<8x256xf32>
    %104 = arith.mulf %102, %103 : vector<8x256xf32>
    %105 = vector.broadcast %18 : vector<1x256xf32> to vector<8x256xf32>
    %106 = arith.addf %104, %105 : vector<8x256xf32>
    %107 = vector.extract_strided_slice %106 {offsets = [0, 0], sizes = [8, 64], strides = [1, 1]} : vector<8x256xf32> to vector<8x64xf32>
    %108 = vector.extract_strided_slice %106 {offsets = [0, 64], sizes = [8, 64], strides = [1, 1]} : vector<8x256xf32> to vector<8x64xf32>
    %109 = vector.extract_strided_slice %106 {offsets = [0, 128], sizes = [8, 64], strides = [1, 1]} : vector<8x256xf32> to vector<8x64xf32>
    %110 = vector.extract_strided_slice %106 {offsets = [0, 192], sizes = [8, 64], strides = [1, 1]} : vector<8x256xf32> to vector<8x64xf32>
    %111 = arith.mulf %108, %94 : vector<8x64xf32>
    %112 = arith.mulf %107, %109 : vector<8x64xf32>
    %113 = arith.addf %111, %112 : vector<8x64xf32>
    %114 = math.tanh %113 : vector<8x64xf32>
    %115 = arith.mulf %110, %114 : vector<8x64xf32>
    %116 = vector.extract_strided_slice %6 {offsets = [40, 0], sizes = [8, 256], strides = [1, 1]} : vector<64x256xf32> to vector<8x256xf32>
    %cst_16 = arith.constant dense<0.000000e+00> : vector<8x256xf32>
    %117 = tpu.matmul %115, %1, %cst_16 {dimension_numbers = #tpu.dot_dimension_numbers<[1], [0], [0], [1], [0, 0, 1, 1], [], []>} : vector<8x64xf32>, vector<64x256xf32>, vector<8x256xf32> -> vector<8x256xf32>
    %118 = arith.addf %116, %117 : vector<8x256xf32>
    %119 = vector.broadcast %15 : vector<1x256xf32> to vector<8x256xf32>
    %120 = arith.mulf %118, %119 : vector<8x256xf32>
    %121 = math.tanh %120 : vector<8x256xf32>
    %122 = vector.broadcast %15 : vector<1x256xf32> to vector<8x256xf32>
    %123 = arith.mulf %121, %122 : vector<8x256xf32>
    %124 = vector.broadcast %18 : vector<1x256xf32> to vector<8x256xf32>
    %125 = arith.addf %123, %124 : vector<8x256xf32>
    %126 = vector.extract_strided_slice %125 {offsets = [0, 0], sizes = [8, 64], strides = [1, 1]} : vector<8x256xf32> to vector<8x64xf32>
    %127 = vector.extract_strided_slice %125 {offsets = [0, 64], sizes = [8, 64], strides = [1, 1]} : vector<8x256xf32> to vector<8x64xf32>
    %128 = vector.extract_strided_slice %125 {offsets = [0, 128], sizes = [8, 64], strides = [1, 1]} : vector<8x256xf32> to vector<8x64xf32>
    %129 = vector.extract_strided_slice %125 {offsets = [0, 192], sizes = [8, 64], strides = [1, 1]} : vector<8x256xf32> to vector<8x64xf32>
    %130 = arith.mulf %127, %113 : vector<8x64xf32>
    %131 = arith.mulf %126, %128 : vector<8x64xf32>
    %132 = arith.addf %130, %131 : vector<8x64xf32>
    %133 = math.tanh %132 : vector<8x64xf32>
    %134 = arith.mulf %129, %133 : vector<8x64xf32>
    %135 = vector.extract_strided_slice %6 {offsets = [48, 0], sizes = [8, 256], strides = [1, 1]} : vector<64x256xf32> to vector<8x256xf32>
    %cst_17 = arith.constant dense<0.000000e+00> : vector<8x256xf32>
    %136 = tpu.matmul %134, %1, %cst_17 {dimension_numbers = #tpu.dot_dimension_numbers<[1], [0], [0], [1], [0, 0, 1, 1], [], []>} : vector<8x64xf32>, vector<64x256xf32>, vector<8x256xf32> -> vector<8x256xf32>
    %137 = arith.addf %135, %136 : vector<8x256xf32>
    %138 = vector.broadcast %15 : vector<1x256xf32> to vector<8x256xf32>
    %139 = arith.mulf %137, %138 : vector<8x256xf32>
    %140 = math.tanh %139 : vector<8x256xf32>
    %141 = vector.broadcast %15 : vector<1x256xf32> to vector<8x256xf32>
    %142 = arith.mulf %140, %141 : vector<8x256xf32>
    %143 = vector.broadcast %18 : vector<1x256xf32> to vector<8x256xf32>
    %144 = arith.addf %142, %143 : vector<8x256xf32>
    %145 = vector.extract_strided_slice %144 {offsets = [0, 0], sizes = [8, 64], strides = [1, 1]} : vector<8x256xf32> to vector<8x64xf32>
    %146 = vector.extract_strided_slice %144 {offsets = [0, 64], sizes = [8, 64], strides = [1, 1]} : vector<8x256xf32> to vector<8x64xf32>
    %147 = vector.extract_strided_slice %144 {offsets = [0, 128], sizes = [8, 64], strides = [1, 1]} : vector<8x256xf32> to vector<8x64xf32>
    %148 = vector.extract_strided_slice %144 {offsets = [0, 192], sizes = [8, 64], strides = [1, 1]} : vector<8x256xf32> to vector<8x64xf32>
    %149 = arith.mulf %146, %132 : vector<8x64xf32>
    %150 = arith.mulf %145, %147 : vector<8x64xf32>
    %151 = arith.addf %149, %150 : vector<8x64xf32>
    %152 = math.tanh %151 : vector<8x64xf32>
    %153 = arith.mulf %148, %152 : vector<8x64xf32>
    %154 = vector.extract_strided_slice %6 {offsets = [56, 0], sizes = [8, 256], strides = [1, 1]} : vector<64x256xf32> to vector<8x256xf32>
    %cst_18 = arith.constant dense<0.000000e+00> : vector<8x256xf32>
    %155 = tpu.matmul %153, %1, %cst_18 {dimension_numbers = #tpu.dot_dimension_numbers<[1], [0], [0], [1], [0, 0, 1, 1], [], []>} : vector<8x64xf32>, vector<64x256xf32>, vector<8x256xf32> -> vector<8x256xf32>
    %156 = arith.addf %154, %155 : vector<8x256xf32>
    %157 = vector.broadcast %15 : vector<1x256xf32> to vector<8x256xf32>
    %158 = arith.mulf %156, %157 : vector<8x256xf32>
    %159 = math.tanh %158 : vector<8x256xf32>
    %160 = vector.broadcast %15 : vector<1x256xf32> to vector<8x256xf32>
    %161 = arith.mulf %159, %160 : vector<8x256xf32>
    %162 = vector.broadcast %18 : vector<1x256xf32> to vector<8x256xf32>
    %163 = arith.addf %161, %162 : vector<8x256xf32>
    %164 = vector.extract_strided_slice %163 {offsets = [0, 0], sizes = [8, 64], strides = [1, 1]} : vector<8x256xf32> to vector<8x64xf32>
    %165 = vector.extract_strided_slice %163 {offsets = [0, 64], sizes = [8, 64], strides = [1, 1]} : vector<8x256xf32> to vector<8x64xf32>
    %166 = vector.extract_strided_slice %163 {offsets = [0, 128], sizes = [8, 64], strides = [1, 1]} : vector<8x256xf32> to vector<8x64xf32>
    %167 = vector.extract_strided_slice %163 {offsets = [0, 192], sizes = [8, 64], strides = [1, 1]} : vector<8x256xf32> to vector<8x64xf32>
    %168 = arith.mulf %165, %151 : vector<8x64xf32>
    %169 = arith.mulf %164, %166 : vector<8x64xf32>
    %170 = arith.addf %168, %169 : vector<8x64xf32>
    %171 = math.tanh %170 : vector<8x64xf32>
    %172 = arith.mulf %167, %171 : vector<8x64xf32>
    %c0_19 = arith.constant 0 : index
    %c0_20 = arith.constant 0 : index
    %173 = vector.load %arg2[%c0_19, %c0_20] : memref<65x128xf32, #tpu.memory_space<vmem>>, vector<64x128xf32>
    %c64 = arith.constant 64 : index
    %c0_21 = arith.constant 0 : index
    %174 = vector.load %arg2[%c64, %c0_21] : memref<65x128xf32, #tpu.memory_space<vmem>>, vector<1x128xf32>
    %cst_22 = arith.constant dense<0.000000e+00> : vector<8x128xf32>
    %175 = tpu.matmul %172, %173, %cst_22 {dimension_numbers = #tpu.dot_dimension_numbers<[1], [0], [0], [1], [0, 0, 1, 1], [], []>} : vector<8x64xf32>, vector<64x128xf32>, vector<8x128xf32> -> vector<8x128xf32>
    %176 = vector.broadcast %174 : vector<1x128xf32> to vector<8x128xf32>
    %177 = arith.addf %175, %176 : vector<8x128xf32>
    %c0_23 = arith.constant 0 : index
    %c0_24 = arith.constant 0 : index
    %178 = vector.load %arg3[%c0_23, %c0_24] : memref<8x128xf32, #tpu.memory_space<vmem>>, vector<8x128xf32>
    tpu.vector_store %arg3[%c0_23, %c0_24], %177 {strides = array<i32>} : memref<8x128xf32, #tpu.memory_space<vmem>>, vector<8x128xf32>,
    return
  }
}

</mosaic_0001>

<bundles_post_ra>
// kernel: tpu_custom_call.1
= control target key start
LH: loop header
LB: loop body
LE: loop exit
PB: predicated region body
PF: predicated region fallthrough
CT: control target
= control target key end

     0   :  { %8 = vsyncpa [#allocation3], 0  ;;  %s1234_s0 = inlined_call_operand.vmem [shape: f32[64,16], index: 0, kind: input, shape index: {}]   ;;  %s1235_s1 = inlined_call_operand.hbm [shape: f32[81,256], index: 1, kind: input, shape index: {}]   ;;  %s1236_s2 = inlined_call_operand.vmem [shape: f32[65,128], index: 2, kind: input, shape index: {}]   ;;  %s1237_s3 = inlined_call_operand.hbm [shape: f32[8,128], index: 3, kind: output, shape index: {}]  }
   0x1   :  { %9 = vsyncpa [#allocation4], 0  ;;  %s16_s14 = sshll.u32 %s1235_s1, 4  ;;  %s889_s15 = smov [#allocation2]   ;;  %s17_s14 = int_to_ptr.hbm [resolvable:$true] %s16_s14 }
   0x2   :  { %s18_s16 = sshll.u32 %s889_s15, 4  ;;  %s890_s17 = smov 256   ;;  %s19_s16 = int_to_ptr.vmem [resolvable:$true] %s18_s16 }
   0x3   :  { %s891_s18 = smov 16  }
   0x4   :  { %24 = dma.hbm_to_vmem [thread:$0]  %s17_s14, 2816, %s19_s16, [#allocation3], %s890_s17, %s890_s17, %s891_s18  }
   0x5   :  { %885 = dma.done.wait [#allocation3], 2816  }
   0x6   :  { %886 = vsyncadd [#allocation3], 4294964480  ;;  %v919_v0 = vld [vmem:[#allocation2 + $0x90] sm:$0xff]  ;;  %v921_v1 = vld [vmem:[#allocation2 + $0x98] sm:$0xff]  ;;  %vm66_vm0 = vcmask 130048   ;;  %v892_v21 = vmov 0.0   ;;  %v173_v22 = vlaneseq }
   0x7   :  { %v923_v2 = vld [vmem:[#allocation2 + $0x80] sm:$0xff]  ;;  %198 = vmatpush.msra.mxu2 %v919_v0  ;;  %218 = vmatpush.msra.mxu3 %v921_v1  ;;  %v927_v3 = vld [vmem:[#allocation2 + $0x88] sm:$0xff]  ;;  %v929_v4 = vld [vmem:[#allocation2 + $0x70] sm:$0xff]  ;;  %v893_v33 = vmov 0.5   ;;  %s894_s20 = smov 64   ;;  %vm186_vm2 = vcmask 523264  }
   0x8   :  { %v931_v5 = vld [vmem:[#allocation2 + $0x78] sm:$0xff]  ;;  %v935_v6 = vld [vmem:[#allocation2 + $0x60] sm:$0xff]  ;;  %v937_v7 = vld [vmem:[#allocation2 + $0x68] sm:$0xff]  ;;  %v174_v23 = vand.u32 127, %v173_v22  ;;  %s895_s25 = smov [#allocation5]   ;;  %s740_s29 = sshll.u32 %s1237_s3, 4  ;;  %s741_s29 = int_to_ptr.hbm [resolvable:$true] %s740_s29 }
   0x9   :  { %199 = vmatpush.msra.mxu2 %v923_v2  ;;  %219 = vmatpush.msra.mxu3 %v927_v3  ;;  %v941_v8 = vld [vmem:[#allocation2 + $0x50] sm:$0xff]  ;;  %v34_v10 = vld [vmem:[#allocation2 + $0x18] sm:$0xff]  ;;  %v31_v12 = vld [vmem:[#allocation2] sm:$0xff]  ;;  %s738_s26 = sshll.u32 %s895_s25, 4  ;;  %s739_s26 = int_to_ptr.vmem [resolvable:$true] %s738_s26 }
   0xa   :  { %v33_v9 = vld [vmem:[#allocation2 + $0x10] sm:$0xff]  ;;  %v943_v11 = vld [vmem:[#allocation2 + $0x58] sm:$0xff]  ;;  %146 = vmatpush.msra.mxu1 %v34_v10  ;;  %v32_v13 = vld [vmem:[#allocation2 + $0x8] sm:$0xff]  ;;  %v175_v27 = vadd.s32 128, %v174_v23 }
   0xb   :  { %200 = vmatpush.msra.mxu2 %v929_v4  ;;  %220 = vmatpush.msra.mxu3 %v931_v5  ;;  %v53_v14 = vld [vmem:[%s1234_s0] sm:$0xff]  ;;  %v952_v16 = vld [vmem:[#allocation2 + $0x48] sm:$0xff]  ;;  %v956_v17 = vld [vmem:[#allocation2 + $0x30] sm:$0xff] }
   0xc   :  { %105 = vmatpush.msra.mxu0 %v33_v9  ;;  %v950_v15 = vld [vmem:[#allocation2 + $0x40] sm:$0xff]  ;;  %147 = vmatpush.msra.mxu1 %v32_v13  ;;  %v958_v18 = vld [vmem:[#allocation2 + $0x38] sm:$0xff]  ;;  %v966_v20 = vld [vmem:[#allocation2 + $0x28] sm:$0xff]  ;;  %vm179_vm1 = vcmp.lt.s32.totalorder %v175_v27, 192 }
   0xd   :  { %201 = vmatpush.msra.mxu2 %v935_v6  ;;  %221 = vmatpush.msra.mxu3 %v937_v7  ;;  %v964_v19 = vld [vmem:[#allocation2 + $0x20] sm:$0xff]  ;;  %v1042_v34 = vsel %vm179_vm1, 1.0, %v893_v33  ;;  %v1045_v43 = vsel %vm179_vm1, 0.0, %v893_v33  ;;  %v54_v53 = vld [vmem:[%s1234_s0 + $0x8] sm:$0xff] }
   0xe   :  { %106 = vmatpush.msra.mxu0 %v31_v12  ;;  %758 = vmatmul.msk.f32.vlgmr.msra.gmra.mxu1 %vm66_vm0, %v53_v14  ;;  %v52_v24 = vld [vmem:[#allocation2 + $0xa0] ss:$8 sm:$0x3] }
   0xf   :  { %202 = vmatpush.msra.mxu2 %v941_v8  ;;  %222 = vmatpush.msra.mxu3 %v943_v11  ;;  %v1036_v25 = vperm.slane %v52_v24, 0  ;;  %v1038_v26 = vperm.slane %v52_v24, 1 }
  0x10   :  { %750 = vmatmul.msk.f32.vlgmr.msra.gmra.mxu0 %vm66_vm0, %v53_v14  ;;  %474 = vmatpush.msrb.mxu1 %v921_v1 }
  0x11   :  { %203 = vmatpush.msra.mxu2 %v950_v15  ;;  %223 = vmatpush.msra.mxu3 %v952_v16 }
  0x12   :  { %454 = vmatpush.msrb.mxu0 %v919_v0  ;;  %475 = vmatpush.msrb.mxu1 %v927_v3 }
  0x13   :  { %204 = vmatpush.msra.mxu2 %v956_v17  ;;  %224 = vmatpush.msra.mxu3 %v958_v18 }
  0x14   :  { %455 = vmatpush.msrb.mxu0 %v923_v2  ;;  %476 = vmatpush.msrb.mxu1 %v931_v5 }
  0x15   :  { %205 = vmatpush.msra.mxu2 %v964_v19  ;;  %225 = vmatpush.msra.mxu3 %v966_v20 }
  0x16   :  { %206 = vmatmul.f32.vlgmr.msra.gmra.mxu2 %v892_v21  ;;  %226 = vmatmul.f32.vlgmr.msra.gmra.mxu3 %v892_v21 }
  0x17   :  { %262 = vmatpush.msrb.mxu2 %v919_v0  ;;  %282 = vmatpush.msrb.mxu3 %v921_v1 }
  0x18   :  { %456 = vmatpush.msrb.mxu0 %v929_v4  ;;  %477 = vmatpush.msrb.mxu1 %v937_v7 }
  0x19   :  { %263 = vmatpush.msrb.mxu2 %v923_v2  ;;  %283 = vmatpush.msrb.mxu3 %v927_v3 }
  0x1a   :  { %457 = vmatpush.msrb.mxu0 %v935_v6  ;;  %478 = vmatpush.msrb.mxu1 %v943_v11 }
  0x1b   :  { %264 = vmatpush.msrb.mxu2 %v929_v4  ;;  %284 = vmatpush.msrb.mxu3 %v931_v5 }
  0x1c   :  { %458 = vmatpush.msrb.mxu0 %v941_v8  ;;  %479 = vmatpush.msrb.mxu1 %v952_v16 }
  0x1d   :  { %265 = vmatpush.msrb.mxu2 %v935_v6  ;;  %285 = vmatpush.msrb.mxu3 %v937_v7 }
  0x1e   :  { %459 = vmatpush.msrb.mxu0 %v950_v15  ;;  %480 = vmatpush.msrb.mxu1 %v958_v18 }
  0x1f   :  { %266 = vmatpush.msrb.mxu2 %v941_v8  ;;  %286 = vmatpush.msrb.mxu3 %v943_v11 }
  0x20   :  { %460 = vmatpush.msrb.mxu0 %v956_v17  ;;  %481 = vmatpush.msrb.mxu1 %v966_v20 }
  0x21   :  { %267 = vmatpush.msrb.mxu2 %v950_v15  ;;  %287 = vmatpush.msrb.mxu3 %v952_v16 }
  0x22   :  { %461 = vmatpush.msrb.mxu0 %v964_v19  ;;  %602 = vmatpush.msra.mxu1 %v921_v1 }
  0x23   :  { %268 = vmatpush.msrb.mxu2 %v956_v17  ;;  %288 = vmatpush.msrb.mxu3 %v958_v18 }
  0x24   :  { %582 = vmatpush.msra.mxu0 %v919_v0  ;;  %603 = vmatpush.msra.mxu1 %v927_v3 }
  0x25   :  { %269 = vmatpush.msrb.mxu2 %v964_v19  ;;  %289 = vmatpush.msrb.mxu3 %v966_v20 }
  0x26   :  { %583 = vmatpush.msra.mxu0 %v923_v2  ;;  %604 = vmatpush.msra.mxu1 %v931_v5 }
  0x27   :  { %326 = vmatpush.msra.mxu2 %v919_v0  ;;  %346 = vmatpush.msra.mxu3 %v921_v1 }
  0x28   :  { %584 = vmatpush.msra.mxu0 %v929_v4  ;;  %605 = vmatpush.msra.mxu1 %v937_v7 }
  0x29   :  { %327 = vmatpush.msra.mxu2 %v923_v2  ;;  %347 = vmatpush.msra.mxu3 %v927_v3 }
  0x2a   :  { %585 = vmatpush.msra.mxu0 %v935_v6  ;;  %606 = vmatpush.msra.mxu1 %v943_v11 }
  0x2b   :  { %328 = vmatpush.msra.mxu2 %v929_v4  ;;  %348 = vmatpush.msra.mxu3 %v931_v5 }
  0x2c   :  { %586 = vmatpush.msra.mxu0 %v941_v8  ;;  %607 = vmatpush.msra.mxu1 %v952_v16 }
  0x2d   :  { %329 = vmatpush.msra.mxu2 %v935_v6  ;;  %349 = vmatpush.msra.mxu3 %v937_v7 }
  0x2e   :  { %587 = vmatpush.msra.mxu0 %v950_v15  ;;  %608 = vmatpush.msra.mxu1 %v958_v18 }
  0x2f   :  { %330 = vmatpush.msra.mxu2 %v941_v8  ;;  %350 = vmatpush.msra.mxu3 %v943_v11 }
  0x30   :  { %588 = vmatpush.msra.mxu0 %v956_v17  ;;  %609 = vmatpush.msra.mxu1 %v966_v20 }
  0x31   :  { %331 = vmatpush.msra.mxu2 %v950_v15  ;;  %351 = vmatpush.msra.mxu3 %v952_v16 }
  0x32   :  { %589 = vmatpush.msra.mxu0 %v964_v19  ;;  %759 = vmatmul.msk.f32.gmra.mxu1 %vm66_vm0, %v54_v53 }
  0x33   :  { %332 = vmatpush.msra.mxu2 %v956_v17  ;;  %352 = vmatpush.msra.mxu3 %v958_v18 }
  0x34   :  { %751 = vmatmul.msk.f32.gmra.mxu0 %vm66_vm0, %v54_v53 }
  0x35   :  { %333 = vmatpush.msra.mxu2 %v964_v19  ;;  %353 = vmatpush.msra.mxu3 %v966_v20 }
  0x8b   :  { %v149_v29 = vpop.f32.mrf.mxu1 }
  0x8c   :  { %v150_v31 = vadd.f32 %v149_v29, %v1038_v26 }
  0x8d   :  { %v108_v28 = vpop.f32.mrf.mxu0 }
  0x8e   :  { %v109_v30 = vadd.f32 %v108_v28, %v1036_v25 }
  0x99   :  { %v207_v32 = vpop.f32.mrf.mxu2  ;;  %v227_v35 = vpop.f32.mrf.mxu3 }
  0x9a   :  { %v230_v36 = vadd.f32 %v207_v32, %v109_v30  ;;  %v231_v37 = vadd.f32 %v227_v35, %v150_v31  ;;  %v55_v31 = vld [vmem:[%s1234_s0 + $0x10] sm:$0xff] }
  0x9b   :  { %752 = vmatmul.msk.f32.gmra.mxu0 %vm66_vm0, %v55_v31  ;;  %760 = vmatmul.msk.f32.gmra.mxu1 %vm66_vm0, %v55_v31 }
  0x9c   :  { %v232_v38 = vmul.f32 0.5, %v230_v36  ;;  %v233_v39 = vmul.f32 %v231_v37, %v1042_v34 }
  0x9e   :  { %789 = vtanh.f32 %v232_v38 }
  0x9f   :  { %791 = vtanh.f32 %v233_v39 }
  0xa4   :  { %v790_v40 = vpop.eup %789 }
  0xa5   :  { %v792_v41 = vpop.eup %791  ;;  %v236_v42 = vmul.f32 0.5, %v790_v40 }
  0xa6   :  { %v237_v44 = vmul.f32 %v792_v41, %v1042_v34 }
  0xa7   :  { %v238_v45 = vadd.f32 0.5, %v236_v42 }
  0xa8   :  { %v239_v46 = vadd.f32 %v237_v44, %v1045_v43 }
  0xa9   :  { %v240_v48 = vmul.f32 0.0, %v238_v45 }
  0xaa   :  { %v241_v47 = vmul.f32 %v239_v46, %v238_v45 }
  0xac   :  { %243 = vrot.lane.b32.xlu0 %v241_v47, %s894_s20 }
  0xaf   :  { %v152_v56 = vpop.f32.mrf.mxu1 }
  0xb0   :  { %v153_v58 = vadd.f32 %v152_v56, %v1038_v26 }
  0xb1   :  { %v111_v55 = vpop.f32.mrf.mxu0 }
  0xb2   :  { %v112_v57 = vadd.f32 %v111_v55, %v1036_v25 }
 0x118   :  { %v114_v33 = vpop.f32.mrf.mxu0  ;;  %v155_v35 = vpop.f32.mrf.mxu1 }
 0x119   :  { %v115_v36 = vadd.f32 %v114_v33, %v1036_v25  ;;  %v156_v37 = vadd.f32 %v155_v35, %v1038_v26 }
 0x11e   :  { %v244_v49 = vpop.permute.xlu0 %243 }
 0x11f   :  { %v246_v50 = vadd.f32 %v244_v49, %v240_v48 }
 0x121   :  { %793 = vtanh.f32 %v246_v50 }
 0x127   :  { %v794_v51 = vpop.eup %793 }
 0x128   :  { %v248_v52 = vmul.f32 %v794_v51, %v239_v46 }
 0x12a   :  { %250 = vrot.lane.b32.xlu0 %v248_v52, %s894_s20 }
 0x19c   :  { %v251_v54 = vpop.permute.xlu0 %250 }
 0x19d   :  { %766 = vmatmul.msk.f32.vlgmr.msrb.gmra.mxu2 %vm186_vm2, %v251_v54  ;;  %767 = vmatmul.msk.f32.vlgmr.msrb.gmra.mxu3 %vm186_vm2, %v251_v54 }
 0x19e   :  { %390 = vmatpush.msrb.mxu2 %v919_v0  ;;  %410 = vmatpush.msrb.mxu3 %v921_v1 }
 0x1a0   :  { %391 = vmatpush.msrb.mxu2 %v923_v2  ;;  %411 = vmatpush.msrb.mxu3 %v927_v3 }
 0x1a2   :  { %392 = vmatpush.msrb.mxu2 %v929_v4  ;;  %412 = vmatpush.msrb.mxu3 %v931_v5 }
 0x1a4   :  { %393 = vmatpush.msrb.mxu2 %v935_v6  ;;  %413 = vmatpush.msrb.mxu3 %v937_v7 }
 0x1a6   :  { %394 = vmatpush.msrb.mxu2 %v941_v8  ;;  %414 = vmatpush.msrb.mxu3 %v943_v11 }
 0x1a8   :  { %395 = vmatpush.msrb.mxu2 %v950_v15  ;;  %415 = vmatpush.msrb.mxu3 %v952_v16 }
 0x1aa   :  { %396 = vmatpush.msrb.mxu2 %v956_v17  ;;  %416 = vmatpush.msrb.mxu3 %v958_v18 }
 0x1ac   :  { %397 = vmatpush.msrb.mxu2 %v964_v19  ;;  %417 = vmatpush.msrb.mxu3 %v966_v20 }
 0x220   :  { %v271_v59 = vpop.f32.mrf.mxu2  ;;  %v291_v60 = vpop.f32.mrf.mxu3 }
 0x221   :  { %v294_v61 = vadd.f32 %v271_v59, %v112_v57  ;;  %v295_v62 = vadd.f32 %v291_v60, %v153_v58  ;;  %v56_v57 = vld [vmem:[%s1234_s0 + $0x18] sm:$0xff]  ;;  %v57_v60 = vld [vmem:[%s1234_s0 + $0x20] sm:$0xff] }
 0x222   :  { %753 = vmatmul.msk.f32.gmra.mxu0 %vm66_vm0, %v56_v57  ;;  %761 = vmatmul.msk.f32.gmra.mxu1 %vm66_vm0, %v56_v57 }
 0x223   :  { %v296_v63 = vmul.f32 0.5, %v294_v61  ;;  %v297_v9 = vmul.f32 %v295_v62, %v1042_v34  ;;  %v58_v61 = vld [vmem:[%s1234_s0 + $0x28] sm:$0xff]  ;;  %v59_v62 = vld [vmem:[%s1234_s0 + $0x30] sm:$0xff] }
 0x225   :  { %795 = vtanh.f32 %v296_v63 }
 0x226   :  { %797 = vtanh.f32 %v297_v9 }
 0x22a   :  { %754 = vmatmul.msk.f32.gmra.mxu0 %vm66_vm0, %v57_v60  ;;  %762 = vmatmul.msk.f32.gmra.mxu1 %vm66_vm0, %v57_v60 }
 0x22b   :  { %v796_v10 = vpop.eup %795 }
 0x22c   :  { %v798_v12 = vpop.eup %797  ;;  %v300_v13 = vmul.f32 0.5, %v796_v10 }
 0x22d   :  { %v301_v14 = vmul.f32 %v798_v12, %v1042_v34  ;;  %v60_v12 = vld [vmem:[%s1234_s0 + $0x38] sm:$0xff] }
 0x22e   :  { %v302_v21 = vadd.f32 0.5, %v300_v13 }
 0x22f   :  { %v303_v22 = vadd.f32 %v301_v14, %v1045_v43 }
 0x230   :  { %v304_v24 = vmul.f32 %v302_v21, %v246_v50 }
 0x231   :  { %v305_v23 = vmul.f32 %v303_v22, %v302_v21 }
 0x232   :  { %755 = vmatmul.msk.f32.gmra.mxu0 %vm66_vm0, %v58_v61  ;;  %763 = vmatmul.msk.f32.gmra.mxu1 %vm66_vm0, %v58_v61 }
 0x233   :  { %307 = vrot.lane.b32.xlu1 %v305_v23, %s894_s20 }
 0x23a   :  { %756 = vmatmul.msk.f32.gmra.mxu0 %vm66_vm0, %v59_v62  ;;  %764 = vmatmul.msk.f32.gmra.mxu1 %vm66_vm0, %v59_v62 }
 0x242   :  { %757 = vmatmul.msk.f32.gmra.mxu0 %vm66_vm0, %v60_v12  ;;  %765 = vmatmul.msk.f32.gmra.mxu1 %vm66_vm0, %v60_v12 }
 0x2a5   :  { %v308_v27 = vpop.permute.xlu1 %307 }
 0x2a6   :  { %v310_v28 = vadd.f32 %v308_v27, %v304_v24 }
 0x2a8   :  { %799 = vtanh.f32 %v310_v28 }
 0x2ae   :  { %v800_v29 = vpop.eup %799 }
 0x2af   :  { %v312_v30 = vmul.f32 %v800_v29, %v303_v22 }
 0x2b1   :  { %314 = vrot.lane.b32.xlu1 %v312_v30, %s894_s20 }
 0x323   :  { %v315_v32 = vpop.permute.xlu1 %314 }
 0x324   :  { %768 = vmatmul.msk.f32.vlgmr.msra.gmra.mxu2 %vm186_vm2, %v315_v32  ;;  %769 = vmatmul.msk.f32.vlgmr.msra.gmra.mxu3 %vm186_vm2, %v315_v32 }
 0x325   :  { %518 = vmatpush.msra.mxu2 %v919_v0  ;;  %538 = vmatpush.msra.mxu3 %v921_v1 }
 0x327   :  { %519 = vmatpush.msra.mxu2 %v923_v2  ;;  %539 = vmatpush.msra.mxu3 %v927_v3 }
 0x329   :  { %520 = vmatpush.msra.mxu2 %v929_v4  ;;  %540 = vmatpush.msra.mxu3 %v931_v5 }
 0x32b   :  { %521 = vmatpush.msra.mxu2 %v935_v6  ;;  %541 = vmatpush.msra.mxu3 %v937_v7 }
 0x32d   :  { %522 = vmatpush.msra.mxu2 %v941_v8  ;;  %542 = vmatpush.msra.mxu3 %v943_v11 }
 0x32f   :  { %523 = vmatpush.msra.mxu2 %v950_v15  ;;  %543 = vmatpush.msra.mxu3 %v952_v16 }
 0x331   :  { %524 = vmatpush.msra.mxu2 %v956_v17  ;;  %544 = vmatpush.msra.mxu3 %v958_v18 }
 0x333   :  { %525 = vmatpush.msra.mxu2 %v964_v19  ;;  %545 = vmatpush.msra.mxu3 %v966_v20 }
 0x3a7   :  { %v335_v38 = vpop.f32.mrf.mxu2  ;;  %v355_v39 = vpop.f32.mrf.mxu3 }
 0x3a8   :  { %v358_v40 = vadd.f32 %v335_v38, %v115_v36  ;;  %v359_v41 = vadd.f32 %v355_v39, %v156_v37 }
 0x3aa   :  { %v360_v42 = vmul.f32 0.5, %v358_v40  ;;  %v361_v44 = vmul.f32 %v359_v41, %v1042_v34 }
 0x3ac   :  { %801 = vtanh.f32 %v360_v42 }
 0x3ad   :  { %803 = vtanh.f32 %v361_v44 }
 0x3b2   :  { %v802_v45 = vpop.eup %801 }
 0x3b3   :  { %v804_v46 = vpop.eup %803  ;;  %v364_v47 = vmul.f32 0.5, %v802_v45 }
 0x3b4   :  { %v365_v48 = vmul.f32 %v804_v46, %v1042_v34 }
 0x3b5   :  { %v366_v49 = vadd.f32 0.5, %v364_v47 }
 0x3b6   :  { %v367_v50 = vadd.f32 %v365_v48, %v1045_v43 }
 0x3b7   :  { %v368_v52 = vmul.f32 %v366_v49, %v310_v28 }
 0x3b8   :  { %v369_v51 = vmul.f32 %v367_v50, %v366_v49 }
 0x3ba   :  { %371 = vrot.lane.b32.xlu2 %v369_v51, %s894_s20 }
 0x414   :  { %v372_v53 = vpop.permute.xlu2 %371 }
 0x415   :  { %v374_v54 = vadd.f32 %v372_v53, %v368_v52 }
 0x417   :  { %805 = vtanh.f32 %v374_v54 }
 0x41d   :  { %v806_v55 = vpop.eup %805 }
 0x41e   :  { %v376_v56 = vmul.f32 %v806_v55, %v367_v50 }
 0x420   :  { %378 = vrot.lane.b32.xlu2 %v376_v56, %s894_s20 }
 0x47a   :  { %v379_v58 = vpop.permute.xlu2 %378 }
 0x47b   :  { %770 = vmatmul.msk.f32.vlgmr.msrb.gmra.mxu2 %vm186_vm2, %v379_v58  ;;  %771 = vmatmul.msk.f32.vlgmr.msrb.gmra.mxu3 %vm186_vm2, %v379_v58 }
 0x47c   :  { %646 = vmatpush.msrb.mxu2 %v919_v0  ;;  %666 = vmatpush.msrb.mxu3 %v921_v1  ;;  %v117_v0 = vpop.f32.mrf.mxu0  ;;  %v158_v1 = vpop.f32.mrf.mxu1 }
 0x47e   :  { %647 = vmatpush.msrb.mxu2 %v923_v2  ;;  %667 = vmatpush.msrb.mxu3 %v927_v3  ;;  %v118_v2 = vadd.f32 %v117_v0, %v1036_v25  ;;  %v159_v3 = vadd.f32 %v158_v1, %v1038_v26 }
 0x480   :  { %648 = vmatpush.msrb.mxu2 %v929_v4  ;;  %668 = vmatpush.msrb.mxu3 %v931_v5 }
 0x482   :  { %649 = vmatpush.msrb.mxu2 %v935_v6  ;;  %669 = vmatpush.msrb.mxu3 %v937_v7 }
 0x484   :  { %650 = vmatpush.msrb.mxu2 %v941_v8  ;;  %670 = vmatpush.msrb.mxu3 %v943_v11  ;;  %v120_v22 = vpop.f32.mrf.mxu0  ;;  %v161_v23 = vpop.f32.mrf.mxu1 }
 0x485   :  { %v121_v32 = vadd.f32 %v120_v22, %v1036_v25  ;;  %v162_v33 = vadd.f32 %v161_v23, %v1038_v26 }
 0x486   :  { %651 = vmatpush.msrb.mxu2 %v950_v15  ;;  %671 = vmatpush.msrb.mxu3 %v952_v16 }
 0x488   :  { %652 = vmatpush.msrb.mxu2 %v956_v17  ;;  %672 = vmatpush.msrb.mxu3 %v958_v18 }
 0x48a   :  { %653 = vmatpush.msrb.mxu2 %v964_v19  ;;  %673 = vmatpush.msrb.mxu3 %v966_v20 }
 0x48c   :  { %v123_v24 = vpop.f32.mrf.mxu0  ;;  %v164_v27 = vpop.f32.mrf.mxu1 }
 0x48d   :  { %v124_v55 = vadd.f32 %v123_v24, %v1036_v25  ;;  %v165_v56 = vadd.f32 %v164_v27, %v1038_v26 }
 0x494   :  { %v126_v28 = vpop.f32.mrf.mxu0  ;;  %v167_v29 = vpop.f32.mrf.mxu1 }
 0x495   :  { %v127_v60 = vadd.f32 %v126_v28, %v1036_v25  ;;  %v168_v61 = vadd.f32 %v167_v29, %v1038_v26 }
 0x49c   :  { %v1163_v30 = vpop.f32.mrf.mxu0  ;;  %v1165_v31 = vpop.f32.mrf.mxu1 }
 0x4fe   :  { %v399_v4 = vpop.f32.mrf.mxu2  ;;  %v419_v5 = vpop.f32.mrf.mxu3 }
 0x4ff   :  { %v422_v6 = vadd.f32 %v399_v4, %v118_v2  ;;  %v423_v7 = vadd.f32 %v419_v5, %v159_v3 }
 0x501   :  { %v424_v8 = vmul.f32 0.5, %v422_v6  ;;  %v425_v11 = vmul.f32 %v423_v7, %v1042_v34 }
 0x503   :  { %807 = vtanh.f32 %v424_v8 }
 0x504   :  { %809 = vtanh.f32 %v425_v11 }
 0x509   :  { %v808_v15 = vpop.eup %807 }
 0x50a   :  { %v810_v16 = vpop.eup %809  ;;  %v428_v17 = vmul.f32 0.5, %v808_v15 }
 0x50b   :  { %v429_v18 = vmul.f32 %v810_v16, %v1042_v34 }
 0x50c   :  { %v430_v19 = vadd.f32 0.5, %v428_v17 }
 0x50d   :  { %v431_v20 = vadd.f32 %v429_v18, %v1045_v43 }
 0x50e   :  { %v432_v63 = vmul.f32 %v430_v19, %v374_v54 }
 0x50f   :  { %v433_v59 = vmul.f32 %v431_v20, %v430_v19 }
 0x511   :  { %435 = vrot.lane.b32.xlu0 %v433_v59, %s894_s20 }
 0x583   :  { %v436_v9 = vpop.permute.xlu0 %435 }
 0x584   :  { %v438_v10 = vadd.f32 %v436_v9, %v432_v63 }
 0x586   :  { %811 = vtanh.f32 %v438_v10 }
 0x58c   :  { %v812_v13 = vpop.eup %811 }
 0x58d   :  { %v440_v14 = vmul.f32 %v812_v13, %v431_v20 }
 0x58f   :  { %442 = vrot.lane.b32.xlu1 %v440_v14, %s894_s20 }
 0x601   :  { %v443_v21 = vpop.permute.xlu1 %442 }
 0x602   :  { %772 = vmatmul.msk.f32.vlgmr.msrb.gmra.mxu0 %vm186_vm2, %v443_v21  ;;  %773 = vmatmul.msk.f32.vlgmr.msrb.gmra.mxu1 %vm186_vm2, %v443_v21 }
 0x67f   :  { %v463_v35 = vpop.f32.mrf.mxu0  ;;  %v483_v36 = vpop.f32.mrf.mxu1 }
 0x680   :  { %v486_v37 = vadd.f32 %v463_v35, %v121_v32  ;;  %v487_v38 = vadd.f32 %v483_v36, %v162_v33 }
 0x682   :  { %v488_v39 = vmul.f32 0.5, %v486_v37  ;;  %v489_v40 = vmul.f32 %v487_v38, %v1042_v34  ;;  %v130_v38 = vadd.f32 %v1163_v30, %v1036_v25 }
 0x684   :  { %813 = vtanh.f32 %v488_v39  ;;  %v171_v39 = vadd.f32 %v1165_v31, %v1038_v26  ;;  %v704_v26 = vld [vmem:[%s1236_s2 + $0x38] sm:$0xff]  ;;  %v703_v31 = vld [vmem:[%s1236_s2 + $0x30] sm:$0xff] }
 0x685   :  { %815 = vtanh.f32 %v489_v40  ;;  %720 = vmatpush.msrb.mxu0 %v704_v26 }
 0x687   :  { %721 = vmatpush.msrb.mxu0 %v703_v31 }
 0x68a   :  { %v814_v41 = vpop.eup %813 }
 0x68b   :  { %v816_v42 = vpop.eup %815  ;;  %v492_v44 = vmul.f32 0.5, %v814_v41 }
 0x68c   :  { %v493_v45 = vmul.f32 %v816_v42, %v1042_v34 }
 0x68d   :  { %v494_v46 = vadd.f32 0.5, %v492_v44 }
 0x68e   :  { %v495_v47 = vadd.f32 %v493_v45, %v1045_v43 }
 0x68f   :  { %v496_v49 = vmul.f32 %v494_v46, %v438_v10 }
 0x690   :  { %v497_v48 = vmul.f32 %v495_v47, %v494_v46 }
 0x692   :  { %499 = vrot.lane.b32.xlu2 %v497_v48, %s894_s20 }
 0x6ec   :  { %v500_v50 = vpop.permute.xlu2 %499 }
 0x6ed   :  { %v502_v51 = vadd.f32 %v500_v50, %v496_v49 }
 0x6ef   :  { %817 = vtanh.f32 %v502_v51 }
 0x6f5   :  { %v818_v52 = vpop.eup %817 }
 0x6f6   :  { %v504_v53 = vmul.f32 %v818_v52, %v495_v47  ;;  %v702_v52 = vld [vmem:[%s1236_s2 + $0x28] sm:$0xff] }
 0x6f7   :  { %722 = vmatpush.msrb.mxu0 %v702_v52 }
 0x6f8   :  { %506 = vrot.lane.b32.xlu0 %v504_v53, %s894_s20  ;;  %v699_v53 = vld [vmem:[%s1236_s2 + $0x10] sm:$0xff] }
 0x76a   :  { %v507_v54 = vpop.permute.xlu0 %506 }
 0x76b   :  { %774 = vmatmul.msk.f32.vlgmr.msra.gmra.mxu2 %vm186_vm2, %v507_v54  ;;  %775 = vmatmul.msk.f32.vlgmr.msra.gmra.mxu3 %vm186_vm2, %v507_v54  ;;  %v698_v54 = vld [vmem:[%s1236_s2 + $0x8] sm:$0xff] }
 0x7ee   :  { %v527_v57 = vpop.f32.mrf.mxu2  ;;  %v547_v58 = vpop.f32.mrf.mxu3 }
 0x7ef   :  { %v550_v0 = vadd.f32 %v527_v57, %v124_v55  ;;  %v551_v1 = vadd.f32 %v547_v58, %v165_v56  ;;  %v697_v55 = vld [vmem:[%s1236_s2] sm:$0xff] }
 0x7f1   :  { %v552_v2 = vmul.f32 0.5, %v550_v0  ;;  %v553_v3 = vmul.f32 %v551_v1, %v1042_v34 }
 0x7f3   :  { %819 = vtanh.f32 %v552_v2 }
 0x7f4   :  { %821 = vtanh.f32 %v553_v3  ;;  %v788_v3 = vld [vmem:[%s1236_s2 + $0x40] ss:$0 sm:$0xff] }
 0x7f9   :  { %v820_v4 = vpop.eup %819 }
 0x7fa   :  { %v822_v5 = vpop.eup %821  ;;  %v556_v6 = vmul.f32 0.5, %v820_v4 }
 0x7fb   :  { %v557_v7 = vmul.f32 %v822_v5, %v1042_v34 }
 0x7fc   :  { %v558_v8 = vadd.f32 0.5, %v556_v6 }
 0x7fd   :  { %v559_v11 = vadd.f32 %v557_v7, %v1045_v43 }
 0x7fe   :  { %v560_v16 = vmul.f32 %v558_v8, %v502_v51 }
 0x7ff   :  { %v561_v15 = vmul.f32 %v559_v11, %v558_v8 }
 0x801   :  { %563 = vrot.lane.b32.xlu1 %v561_v15, %s894_s20 }
 0x873   :  { %v564_v17 = vpop.permute.xlu1 %563 }
 0x874   :  { %v566_v18 = vadd.f32 %v564_v17, %v560_v16 }
 0x876   :  { %823 = vtanh.f32 %v566_v18 }
 0x87c   :  { %v824_v19 = vpop.eup %823 }
 0x87d   :  { %v568_v20 = vmul.f32 %v824_v19, %v559_v11 }
 0x87f   :  { %570 = vrot.lane.b32.xlu2 %v568_v20, %s894_s20 }
 0x8d9   :  { %v571_v59 = vpop.permute.xlu2 %570 }
 0x8da   :  { %776 = vmatmul.msk.f32.vlgmr.msra.gmra.mxu0 %vm186_vm2, %v571_v59  ;;  %777 = vmatmul.msk.f32.vlgmr.msra.gmra.mxu1 %vm186_vm2, %v571_v59 }
 0x957   :  { %v591_v62 = vpop.f32.mrf.mxu0  ;;  %v611_v63 = vpop.f32.mrf.mxu1 }
 0x958   :  { %v614_v9 = vadd.f32 %v591_v62, %v127_v60  ;;  %v615_v10 = vadd.f32 %v611_v63, %v168_v61 }
 0x95a   :  { %v616_v12 = vmul.f32 0.5, %v614_v9  ;;  %v617_v13 = vmul.f32 %v615_v10, %v1042_v34 }
 0x95c   :  { %825 = vtanh.f32 %v616_v12 }
 0x95d   :  { %827 = vtanh.f32 %v617_v13 }
 0x962   :  { %v826_v14 = vpop.eup %825 }
 0x963   :  { %v828_v21 = vpop.eup %827  ;;  %v620_v22 = vmul.f32 0.5, %v826_v14 }
 0x964   :  { %v621_v23 = vmul.f32 %v828_v21, %v1042_v34 }
 0x965   :  { %v622_v24 = vadd.f32 0.5, %v620_v22 }
 0x966   :  { %v623_v27 = vadd.f32 %v621_v23, %v1045_v43 }
 0x967   :  { %v624_v29 = vmul.f32 %v622_v24, %v566_v18 }
 0x968   :  { %v625_v28 = vmul.f32 %v623_v27, %v622_v24 }
 0x96a   :  { %627 = vrot.lane.b32.xlu0 %v625_v28, %s894_s20 }
 0x9dc   :  { %v628_v32 = vpop.permute.xlu0 %627 }
 0x9dd   :  { %v630_v33 = vadd.f32 %v628_v32, %v624_v29 }
 0x9df   :  { %829 = vtanh.f32 %v630_v33 }
 0x9e5   :  { %v830_v35 = vpop.eup %829 }
 0x9e6   :  { %v632_v36 = vmul.f32 %v830_v35, %v623_v27 }
 0x9e8   :  { %634 = vrot.lane.b32.xlu1 %v632_v36, %s894_s20 }
 0xa5a   :  { %v635_v37 = vpop.permute.xlu1 %634 }
 0xa5b   :  { %778 = vmatmul.msk.f32.vlgmr.msrb.gmra.mxu2 %vm186_vm2, %v635_v37  ;;  %779 = vmatmul.msk.f32.vlgmr.msrb.gmra.mxu3 %vm186_vm2, %v635_v37 }
 0xade   :  { %v655_v40 = vpop.f32.mrf.mxu2  ;;  %v675_v41 = vpop.f32.mrf.mxu3 }
 0xadf   :  { %v678_v42 = vadd.f32 %v655_v40, %v130_v38  ;;  %v679_v44 = vadd.f32 %v675_v41, %v171_v39 }
 0xae1   :  { %v680_v45 = vmul.f32 0.5, %v678_v42  ;;  %v681_v46 = vmul.f32 %v679_v44, %v1042_v34 }
 0xae3   :  { %831 = vtanh.f32 %v680_v45 }
 0xae4   :  { %833 = vtanh.f32 %v681_v46 }
 0xae9   :  { %v832_v47 = vpop.eup %831 }
 0xaea   :  { %v834_v48 = vpop.eup %833  ;;  %v684_v49 = vmul.f32 0.5, %v832_v47 }
 0xaeb   :  { %v685_v50 = vmul.f32 %v834_v48, %v1042_v34  ;;  %v701_v34 = vld [vmem:[%s1236_s2 + $0x20] sm:$0xff] }
 0xaec   :  { %v686_v51 = vadd.f32 0.5, %v684_v49  ;;  %723 = vmatpush.msrb.mxu0 %v701_v34 }
 0xaed   :  { %v687_v25 = vadd.f32 %v685_v50, %v1045_v43  ;;  %v700_v43 = vld [vmem:[%s1236_s2 + $0x18] sm:$0xff] }
 0xaee   :  { %724 = vmatpush.msrb.mxu0 %v700_v43  ;;  %v688_v56 = vmul.f32 %v686_v51, %v630_v33 }
 0xaef   :  { %v689_v30 = vmul.f32 %v687_v25, %v686_v51 }
 0xaf0   :  { %725 = vmatpush.msrb.mxu0 %v699_v53 }
 0xaf1   :  { %691 = vrot.lane.b32.xlu2 %v689_v30, %s894_s20 }
 0xaf2   :  { %726 = vmatpush.msrb.mxu0 %v698_v54 }
 0xaf4   :  { %727 = vmatpush.msrb.mxu0 %v697_v55 }
 0xb4b   :  { %v692_v57 = vpop.permute.xlu2 %691 }
 0xb4c   :  { %v694_v58 = vadd.f32 %v692_v57, %v688_v56 }
 0xb4e   :  { %835 = vtanh.f32 %v694_v58 }
 0xb54   :  { %v836_v0 = vpop.eup %835 }
 0xb55   :  { %v696_v1 = vmul.f32 %v836_v0, %v687_v25 }
 0xb57   :  { %708 = vrot.lane.b32.xlu0 %v696_v1, %s894_s20 }
 0xbc9   :  { %v709_v2 = vpop.permute.xlu0 %708 }
 0xbca   :  { %780 = vmatmul.msk.f32.vlgmr.msrb.gmra.mxu0 %vm186_vm2, %v709_v2 }
 0xc47   :  { %v729_v4 = vpop.f32.mrf.mxu0 }
 0xc48   :  { %v730_v5 = vadd.f32 %v788_v3, %v729_v4 }
 0xc4a   :  { %732 = vst [vmem:[#allocation5] sm:$0xff] %v730_v5 }
 0xc4b   :  { %743 = dma.vmem_to_hbm [thread:$0]  %s739_s26, 128, %s741_s29, [#allocation4]  }
 0xc4c   :  { %887 = dma.done.wait [#allocation4], 128  }
 0xc4d   :  { %888 = vsyncadd [#allocation4], 4294967168 }
 0xc4e   :  { %748 = vsyncpa [#allocation3], 1 }
 0xc4f   :  { %749 = vsyncpa [#allocation4], 1 }

</bundles_post_ra>
